<compile_context>
chip_gen: v7x
topology: tpu7x:2x2x1
jax: 0.10.0
libtpu: 0.0.40
codegen_flags: <defaults>
</compile_context>

<pallas_src>
import functools

import jax
import jax.numpy as jnp
from jax import lax
from jax.experimental import pallas as pl
from jax.experimental.pallas import tpu as pltpu


def _mask_b_3x3():
    """3x3 PixelCNN mask 'B' (keeps row 0 fully, row 1 up to and incl. center)."""
    m = jnp.zeros((3, 3), jnp.float32)
    m = m.at[0, :].set(1.0)
    m = m.at[1, :2].set(1.0)
    return m


def _prep_weights(conv1_w, conv2_w, conv3_w, W, compute_dtype):
    """PyTorch conv weights -> lane-dense block matrices.

    conv1_w: (Ch, C, 1, 1)  -> w1_big (W*C,  W*Ch)  = kron(I_W, w1)  (block-diag)
    conv2_w: (Ch, Ch, 3, 3) -> a0, a1 (W*Ch, W*Ch)  block-banded matrices for the
                               y-1 / y rows of the masked 3x3 conv (kx shifts and
                               W-boundary zero padding folded in)
    conv3_w: (C, Ch, 1, 1)  -> w3_big (W*Ch, W*C)
    """
    w1 = conv1_w[:, :, 0, 0].T                        # (C, Ch)
    w3 = conv3_w[:, :, 0, 0].T                        # (Ch, C)
    Ch = w1.shape[1]
    # (ky, kx, Cin, Cout), mask 'B' applied at forward time (as in the module).
    w2 = jnp.transpose(conv2_w, (2, 3, 1, 0)) * _mask_b_3x3()[:, :, None, None]

    eye = jnp.eye(W, dtype=w1.dtype)
    w1_big = jnp.kron(eye, w1)                        # (W*C,  W*Ch)
    w3_big = jnp.kron(eye, w3)                        # (W*Ch, W*C)

    # shift[kx][w_src, w_dst] = 1 iff w_src == w_dst + kx - 1 (inside [0, W)).
    shift = jnp.stack([jnp.eye(W, k=1 - kx, dtype=w2.dtype) for kx in range(3)])
    a0 = jnp.einsum("kxw,kcd->xcwd", shift, w2[0]).reshape(W * Ch, W * Ch)
    a1 = jnp.einsum("kxw,kcd->xcwd", shift, w2[1]).reshape(W * Ch, W * Ch)
    # w2[2] is fully masked -> no ky=2 term and no bottom halo row needed.

    cd = compute_dtype
    return w1_big.astype(cd), a0.astype(cd), a1.astype(cd), w3_big.astype(cd)


def _resblock_kernel(x_ref, w1_ref, a0_ref, a1_ref, w3_ref, o_ref, *, img_h):
    """One block = `bn` whole images, laid out lane-dense as (bn*H, W*C)."""
    BH, _ = x_ref.shape
    WCh = w1_ref.shape[1]
    cd = w1_ref.dtype                                  # matmul operand dtype

    x = x_ref[...]                                     # (bn*H, W*C)
    xf = x.astype(jnp.float32)

    # ---- 1x1 conv (C -> Ch) + ReLU : block-diag matmul over the lane axis ----
    h1 = jnp.maximum(
        jnp.dot(x.astype(cd), w1_ref[...], preferred_element_type=jnp.float32),
        0.0)                                           # (bn*H, W*Ch) f32

    # ---- masked 3x3 conv ('B') + ReLU : two fused block-banded matmuls ----
    # Row y-1 contribution: h1 shifted down one row, zero halo row at the top
    # of every image (no padded scratch, no extra store passes).
    zero_row = jnp.zeros((1, WCh), jnp.float32)
    h1_up = jnp.concatenate([zero_row, h1[:-1, :]], axis=0)
    if BH // img_h > 1:                                # zero each image's halo row
        row_ids = lax.broadcasted_iota(jnp.int32, (BH, 1), 0)
        h1_up = jnp.where(row_ids % img_h == 0, 0.0, h1_up)
    h2 = jnp.maximum(
        jnp.dot(h1_up.astype(cd), a0_ref[...], preferred_element_type=jnp.float32)
        + jnp.dot(h1.astype(cd), a1_ref[...], preferred_element_type=jnp.float32),
        0.0)                                           # (bn*H, W*Ch) f32

    # ---- 1x1 conv (Ch -> C) + ReLU ----
    h3 = jnp.maximum(
        jnp.dot(h2.astype(cd), w3_ref[...], preferred_element_type=jnp.float32),
        0.0)                                           # (bn*H, W*C) f32

    # ---- residual add; single lane-dense store ----
    o_ref[...] = (xf + h3).astype(o_ref.dtype)


@functools.partial(jax.jit, static_argnames=("batch_block", "compute_dtype"))
def residual_block(x, conv1_w, conv2_w, conv3_w, *,
                   batch_block=None, compute_dtype=jnp.float32):
    """x: (N, H, W, C) NHWC.  Weights in PyTorch Conv2d layout:
    conv1_w (Ch, C, 1, 1), conv2_w (Ch, Ch, 3, 3) unmasked, conv3_w (C, Ch, 1, 1).
    Pass compute_dtype=jnp.bfloat16 on v6e/v7x to halve matmul-operand traffic."""
    N, H, W, C = x.shape
    Ch = conv1_w.shape[0]
    assert H % 8 == 0, "H must be a multiple of 8 (sublane tiling)"

    w1b, a0, a1, w3b = _prep_weights(conv1_w, conv2_w, conv3_w, W, compute_dtype)

    # Batch folding: make each grid step move a decent-sized block, but keep at
    # least 2 grid steps so both v7x TensorCores / the pipeline have work.
    if batch_block is None:
        per_img = H * W * C * x.dtype.itemsize
        bn = max(1, min(N, (512 * 1024) // max(per_img, 1)))
        bn = min(bn, max(1, N // 2))
        while N % bn:
            bn -= 1
    else:
        bn = batch_block
        assert N % bn == 0
    WC, WCh = W * C, W * Ch

    x_flat = x.reshape(N * H, WC)       # lane-dense view of NHWC (free reshape)

    flops = 2 * N * H * W * (C * Ch + 5 * Ch * Ch + Ch * C)
    wbytes = (w1b.size + a0.size + a1.size + w3b.size) * jnp.dtype(compute_dtype).itemsize
    bytes_accessed = 2 * x.size * x.dtype.itemsize + wbytes

    out = pl.pallas_call(
        functools.partial(_resblock_kernel, img_h=H),
        out_shape=jax.ShapeDtypeStruct((N * H, WC), x.dtype),
        grid_spec=pltpu.PrefetchScalarGridSpec(
            num_scalar_prefetch=0,
            grid=(N // bn,),
            in_specs=[
                pl.BlockSpec((bn * H, WC), lambda n: (n, 0)),
                pl.BlockSpec((WC, WCh), lambda n: (0, 0)),
                pl.BlockSpec((WCh, WCh), lambda n: (0, 0)),
                pl.BlockSpec((WCh, WCh), lambda n: (0, 0)),
                pl.BlockSpec((WCh, WC), lambda n: (0, 0)),
            ],
            out_specs=pl.BlockSpec((bn * H, WC), lambda n: (n, 0)),
        ),
        compiler_params=pltpu.CompilerParams(
            dimension_semantics=("parallel",),
            vmem_limit_bytes=32 * 1024 * 1024),
        cost_estimate=pl.CostEstimate(flops=flops, transcendentals=0,
                                      bytes_accessed=bytes_accessed),
    )(x_flat, w1b, a0, a1, w3b)
    return out.reshape(N, H, W, C)


def _ref_forward(x, conv1_w, conv2_w, conv3_w):
    """Pure-JAX NHWC reference mirroring the PyTorch module."""
    N, H, W, C = x.shape
    w1 = conv1_w[:, :, 0, 0].T
    w3 = conv3_w[:, :, 0, 0].T
    w2 = jnp.transpose(conv2_w, (2, 3, 1, 0)) * _mask_b_3x3()[:, :, None, None]
    h1 = jax.nn.relu(jnp.einsum("nhwc,cd->nhwd", x, w1))
    hp = jnp.pad(h1, ((0, 0), (1, 1), (1, 1), (0, 0)))
    acc = jnp.zeros_like(h1)
    for ky in range(3):
        for kx in range(3):
            acc = acc + jnp.einsum("nhwc,cd->nhwd",
                                   hp[:, ky:ky + H, kx:kx + W, :], w2[ky, kx])
    h2 = jax.nn.relu(acc)
    h3 = jax.nn.relu(jnp.einsum("nhwc,cd->nhwd", h2, w3))
    return x + h3


if __name__ == "__main__":
    key = jax.random.PRNGKey(0)
    kx_, k1, k2, k3 = jax.random.split(key, 4)

    N, C, Hs, Ws = 2, 8, 16, 16            # in_channels == out_channels == 8
    Ch = C // 2
    # NHWC input (equivalent to PyTorch NCHW (2, 8, 16, 16) transposed).
    x = jax.random.normal(kx_, (N, Hs, Ws, C), jnp.float32)
    # Weights in PyTorch Conv2d layout; mask 'B' is applied inside the wrapper
    # (as the module does at forward time).
    conv1_w = jax.random.normal(k1, (Ch, C, 1, 1), jnp.float32) * 0.3
    conv2_w = jax.random.normal(k2, (Ch, Ch, 3, 3), jnp.float32) * 0.3
    conv3_w = jax.random.normal(k3, (C, Ch, 1, 1), jnp.float32) * 0.3

    out = residual_block(x, conv1_w, conv2_w, conv3_w)
    out = jax.block_until_ready(out)

    ref = _ref_forward(x, conv1_w, conv2_w, conv3_w)
    assert out.shape == (N, Hs, Ws, C)
    assert jnp.allclose(out, ref, atol=1e-4, rtol=1e-4), "mismatch vs reference"

    print("KERNEL_OK")
</pallas_src>

<mosaic_0001>
module attributes {stable_mosaic.version = 11 : i64} {
  func.func @_resblock_kernel(%arg0: i32, %arg1: memref<16x128xf32, #tpu.memory_space<vmem>>, %arg2: memref<128x64xf32, #tpu.memory_space<vmem>>, %arg3: memref<64x64xf32, #tpu.memory_space<vmem>>, %arg4: memref<64x64xf32, #tpu.memory_space<vmem>>, %arg5: memref<64x128xf32, #tpu.memory_space<vmem>>, %arg6: memref<16x128xf32, #tpu.memory_space<vmem>>) attributes {dimension_semantics = [#tpu.dimension_semantics<parallel>], iteration_bounds = array<i64: 2>, scalar_prefetch = 0 : i64, scratch_operands = 0 : i64, tpu.core_type = #tpu.core_type<tc>, window_params = [{transform_indices = @transform_0, window_bounds = array<i64: 16, 128>}, {pipeline_mode = #tpu.pipeline_mode<synchronous>, transform_indices = @transform_1, window_bounds = array<i64: 128, 64>}, {pipeline_mode = #tpu.pipeline_mode<synchronous>, transform_indices = @transform_2, window_bounds = array<i64: 64, 64>}, {pipeline_mode = #tpu.pipeline_mode<synchronous>, transform_indices = @transform_3, window_bounds = array<i64: 64, 64>}, {pipeline_mode = #tpu.pipeline_mode<synchronous>, transform_indices = @transform_4, window_bounds = array<i64: 64, 128>}, {transform_indices = @transform_5, window_bounds = array<i64: 16, 128>}]} {
    %c0 = arith.constant 0 : index
    %c0_0 = arith.constant 0 : index
    %0 = vector.load %arg1[%c0, %c0_0] : memref<16x128xf32, #tpu.memory_space<vmem>>, vector<16x128xf32>
    %c0_1 = arith.constant 0 : index
    %c0_2 = arith.constant 0 : index
    %1 = vector.load %arg2[%c0_1, %c0_2] : memref<128x64xf32, #tpu.memory_space<vmem>>, vector<128x64xf32>
    %cst = arith.constant dense<0.000000e+00> : vector<16x64xf32>
    %2 = tpu.matmul %0, %1, %cst {dimension_numbers = #tpu.dot_dimension_numbers<[1], [0], [0], [1], [0, 0, 1, 1], [], []>} : vector<16x128xf32>, vector<128x64xf32>, vector<16x64xf32> -> vector<16x64xf32>
    %cst_3 = arith.constant 0.000000e+00 : f32
    %3 = vector.broadcast %cst_3 : f32 to vector<16x64xf32>
    %4 = arith.maximumf %2, %3 : vector<16x64xf32>
    %cst_4 = arith.constant 0.000000e+00 : f32
    %5 = vector.broadcast %cst_4 : f32 to vector<1x64xf32>
    %6 = vector.extract_strided_slice %4 {offsets = [0, 0], sizes = [15, 64], strides = [1, 1]} : vector<16x64xf32> to vector<15x64xf32>
    %7 = tpu.concatenate %5, %6 in 0 : vector<1x64xf32>, vector<15x64xf32> -> vector<16x64xf32>
    %c0_5 = arith.constant 0 : index
    %c0_6 = arith.constant 0 : index
    %8 = vector.load %arg3[%c0_5, %c0_6] : memref<64x64xf32, #tpu.memory_space<vmem>>, vector<64x64xf32>
    %cst_7 = arith.constant dense<0.000000e+00> : vector<16x64xf32>
    %9 = tpu.matmul %7, %8, %cst_7 {dimension_numbers = #tpu.dot_dimension_numbers<[1], [0], [0], [1], [0, 0, 1, 1], [], []>} : vector<16x64xf32>, vector<64x64xf32>, vector<16x64xf32> -> vector<16x64xf32>
    %c0_8 = arith.constant 0 : index
    %c0_9 = arith.constant 0 : index
    %10 = vector.load %arg4[%c0_8, %c0_9] : memref<64x64xf32, #tpu.memory_space<vmem>>, vector<64x64xf32>
    %cst_10 = arith.constant dense<0.000000e+00> : vector<16x64xf32>
    %11 = tpu.matmul %4, %10, %cst_10 {dimension_numbers = #tpu.dot_dimension_numbers<[1], [0], [0], [1], [0, 0, 1, 1], [], []>} : vector<16x64xf32>, vector<64x64xf32>, vector<16x64xf32> -> vector<16x64xf32>
    %12 = arith.addf %9, %11 : vector<16x64xf32>
    %cst_11 = arith.constant 0.000000e+00 : f32
    %13 = vector.broadcast %cst_11 : f32 to vector<16x64xf32>
    %14 = arith.maximumf %12, %13 : vector<16x64xf32>
    %c0_12 = arith.constant 0 : index
    %c0_13 = arith.constant 0 : index
    %15 = vector.load %arg5[%c0_12, %c0_13] : memref<64x128xf32, #tpu.memory_space<vmem>>, vector<64x128xf32>
    %cst_14 = arith.constant dense<0.000000e+00> : vector<16x128xf32>
    %16 = tpu.matmul %14, %15, %cst_14 {dimension_numbers = #tpu.dot_dimension_numbers<[1], [0], [0], [1], [0, 0, 1, 1], [], []>} : vector<16x64xf32>, vector<64x128xf32>, vector<16x128xf32> -> vector<16x128xf32>
    %cst_15 = arith.constant 0.000000e+00 : f32
    %17 = vector.broadcast %cst_15 : f32 to vector<16x128xf32>
    %18 = arith.maximumf %16, %17 : vector<16x128xf32>
    %19 = arith.addf %0, %18 : vector<16x128xf32>
    %c0_16 = arith.constant 0 : index
    %c0_17 = arith.constant 0 : index
    %20 = vector.load %arg6[%c0_16, %c0_17] : memref<16x128xf32, #tpu.memory_space<vmem>>, vector<16x128xf32>
    tpu.vector_store %arg6[%c0_16, %c0_17], %19 {strides = array<i32>} : memref<16x128xf32, #tpu.memory_space<vmem>>, vector<16x128xf32>,
    return
  }
  func.func @transform_0(%arg0: i32) -> (i32, i32) {
    %c0_i32 = arith.constant 0 : i32
    %c0_i32_0 = arith.constant 0 : i32
    return %arg0, %c0_i32 : i32, i32
  }
  func.func @transform_1(%arg0: i32) -> (i32, i32) {
    %c0_i32 = arith.constant 0 : i32
    %c0_i32_0 = arith.constant 0 : i32
    %c0_i32_1 = arith.constant 0 : i32
    return %c0_i32, %c0_i32_0 : i32, i32
  }
  func.func @transform_2(%arg0: i32) -> (i32, i32) {
    %c0_i32 = arith.constant 0 : i32
    %c0_i32_0 = arith.constant 0 : i32
    %c0_i32_1 = arith.constant 0 : i32
    return %c0_i32, %c0_i32_0 : i32, i32
  }
  func.func @transform_3(%arg0: i32) -> (i32, i32) {
    %c0_i32 = arith.constant 0 : i32
    %c0_i32_0 = arith.constant 0 : i32
    %c0_i32_1 = arith.constant 0 : i32
    return %c0_i32, %c0_i32_0 : i32, i32
  }
  func.func @transform_4(%arg0: i32) -> (i32, i32) {
    %c0_i32 = arith.constant 0 : i32
    %c0_i32_0 = arith.constant 0 : i32
    %c0_i32_1 = arith.constant 0 : i32
    return %c0_i32, %c0_i32_0 : i32, i32
  }
  func.func @transform_5(%arg0: i32) -> (i32, i32) {
    %c0_i32 = arith.constant 0 : i32
    %c0_i32_0 = arith.constant 0 : i32
    return %arg0, %c0_i32 : i32, i32
  }
}

</mosaic_0001>

<bundles_post_ra>
// kernel: residual_block.1
= control target key start
LH: loop header
LB: loop body
LE: loop exit
PB: predicated region body
PF: predicated region fallthrough
CT: control target
= control target key end

     0   :  { %s945_s18 = smov 0   ;;  %s1107_s0 = inlined_call_operand.vmem [shape: f32[32,128], index: 0, kind: input, shape index: {}]   ;;  %s1108_s1 = inlined_call_operand.vmem [shape: f32[128,64], index: 1, kind: input, shape index: {}]   ;;  %s1109_s2 = inlined_call_operand.vmem [shape: f32[64,64], index: 2, kind: input, shape index: {}]   ;;  %s1110_s3 = inlined_call_operand.vmem [shape: f32[64,64], index: 3, kind: input, shape index: {}]   ;;  %s1111_s4 = inlined_call_operand.vmem [shape: f32[64,128], index: 4, kind: input, shape index: {}]   ;;  %s1112_s5 = inlined_call_operand.vmem [shape: f32[32,128], index: 5, kind: output, shape index: {}]  }
   0x1 LB: > { %s660_s19 = sadd.s32 4294967295, %s913_s18   ;;  %p664_p0 = scmp.ge.s32.totalorder %s913_s18, 1  ;;  %s913_s18 = sphi %s945_s18, %s15_s18  }
   0x2   : > { %p188_p1 = scmp.lt.s32.totalorder %s913_s18, 3 }
   0x4   : > { %p189_p2 = pnand %p664_p0, %p188_p1 }
   0x5   : > { %v230_v0 = vld [vmem:[%s1108_s1] sm:$0xff] (!%p189_p2)  ;;  %v231_v1 = vld [vmem:[%s1108_s1 + $0x8] sm:$0xff] (!%p189_p2)  ;;  %v232_v2 = vld [vmem:[%s1108_s1 + $0x10] sm:$0xff] (!%p189_p2)  ;;  %s665_s26 = sshll.u32 (!%p189_p2), %s660_s19, 1  ;;  %vm347_vm0 = vcmask (!%p189_p2), 523264   ;;  %vm325_vm1 = vcmask (!%p189_p2), 1040384  }
   0x6   : > { %192 = sbr.rel (%p189_p2) target bundleno = 706 (0x2c2), region = 40  ;;  %v817_v3 = vpack.c.bf16 (!%p189_p2), %v231_v1, %v230_v0  ;;  %v233_v4 = vld [vmem:[%s1108_s1 + $0x18] sm:$0xff] (!%p189_p2)  ;;  %p217_p3 = scmp.lt.s32.totalorder (!%p189_p2), %s665_s26, 3  ;;  %v234_v6 = vld [vmem:[%s1108_s1 + $0x20] sm:$0xff] (!%p189_p2)  ;;  %v235_v7 = vld [vmem:[%s1108_s1 + $0x28] sm:$0xff] (!%p189_p2) }
   0x7   : > { %v821_v5 = vpack.c.bf16 (!%p189_p2), %v233_v4, %v232_v2  ;;  %v825_v8 = vpack.c.bf16 (!%p189_p2), %v235_v7, %v234_v6  ;;  %v236_v9 = vld [vmem:[%s1108_s1 + $0x30] sm:$0xff] (!%p189_p2)  ;;  %v339_v10 = vld [vmem:[%s1110_s3] sm:$0xff] (!%p189_p2)  ;;  %v340_v11 = vld [vmem:[%s1110_s3 + $0x8] sm:$0xff] (!%p189_p2) }
   0x8   : > { %818 = vmatprep.subr.bf16.mxu0 (!%p189_p2), %v817_v3  ;;  %v237_v12 = vld [vmem:[%s1108_s1 + $0x38] sm:$0xff] (!%p189_p2)  ;;  %v849_v13 = vpack.c.bf16 (!%p189_p2), %v340_v11, %v339_v10  ;;  %v341_v14 = vld [vmem:[%s1110_s3 + $0x10] sm:$0xff] (!%p189_p2)  ;;  %v343_v18 = vld [vmem:[%s1110_s3 + $0x20] sm:$0xff] (!%p189_p2) }
   0x9   : > { %820 = vmatpush3.bf16.msra.mxu0 (!%p189_p2), %v817_v3  ;;  %v342_v15 = vld [vmem:[%s1110_s3 + $0x18] sm:$0xff] (!%p189_p2)  ;;  %v344_v19 = vld [vmem:[%s1110_s3 + $0x28] sm:$0xff] (!%p189_p2)  ;;  %v829_v20 = vpack.c.bf16 (!%p189_p2), %v237_v12, %v236_v9  ;;  %v238_v21 = vld [vmem:[%s1108_s1 + $0x40] sm:$0xff] (!%p189_p2) }
   0xa   : > { %822 = vmatprep.subr.bf16.mxu0 (!%p189_p2), %v821_v5  ;;  %v853_v17 = vpack.c.bf16 (!%p189_p2), %v342_v15, %v341_v14  ;;  %850 = vmatprep.subr.bf16.mxu1 (!%p189_p2), %v849_v13  ;;  %v239_v22 = vld [vmem:[%s1108_s1 + $0x48] sm:$0xff] (!%p189_p2)  ;;  %v857_v23 = vpack.c.bf16 (!%p189_p2), %v344_v19, %v343_v18  ;;  %v240_v25 = vld [vmem:[%s1108_s1 + $0x50] sm:$0xff] (!%p189_p2)  ;;  %v241_v26 = vld [vmem:[%s1108_s1 + $0x58] sm:$0xff] (!%p189_p2) }
   0xb   : > { %852 = vmatpush3.bf16.msra.mxu1 (!%p189_p2), %v849_v13  ;;  %v833_v24 = vpack.c.bf16 (!%p189_p2), %v239_v22, %v238_v21  ;;  %v837_v27 = vpack.c.bf16 (!%p189_p2), %v241_v26, %v240_v25  ;;  %v242_v28 = vld [vmem:[%s1108_s1 + $0x60] sm:$0xff] (!%p189_p2)  ;;  %v243_v29 = vld [vmem:[%s1108_s1 + $0x68] sm:$0xff] (!%p189_p2)  ;;  %v244_v31 = vld [vmem:[%s1108_s1 + $0x70] sm:$0xff] (!%p189_p2) }
   0xc   : > { %854 = vmatprep.subr.bf16.mxu1 (!%p189_p2), %v853_v17  ;;  %v841_v30 = vpack.c.bf16 (!%p189_p2), %v243_v29, %v242_v28  ;;  %v245_v32 = vld [vmem:[%s1108_s1 + $0x78] sm:$0xff] (!%p189_p2)  ;;  %v345_v35 = vld [vmem:[%s1110_s3 + $0x30] sm:$0xff] (!%p189_p2)  ;;  %v331_v38 = vld [vmem:[%s1109_s2] sm:$0xff] (!%p189_p2) }
   0xd   : > { %s1114_s26 = smov (!%p217_p3, %s665_s26), 3  ;;  %824 = vmatpush3.bf16.msra.mxu0 %v821_v5  ;;  %v845_v33 = vpack.c.bf16 %v245_v32, %v244_v31  ;;  %v346_v36 = vld [vmem:[%s1110_s3 + $0x38] sm:$0xff]  ;;  %v332_v39 = vld [vmem:[%s1109_s2 + $0x8] sm:$0xff]  ;;  %v509_v41 = vld [vmem:[%s1111_s4] sm:$0xff] }
   0xe   : > { %s666_s10 = sshll.u32 %s1114_s26, 3  ;;  %826 = vmatprep.subr.bf16.mxu0 %v825_v8  ;;  %v861_v37 = vpack.c.bf16 %v346_v36, %v345_v35  ;;  %v865_v40 = vpack.c.bf16 %v332_v39, %v331_v38  ;;  %v510_v42 = vld [vmem:[%s1111_s4 + $0x8] sm:$0xff]  ;;  %v511_v43 = vld [vmem:[%s1111_s4 + $0x10] sm:$0xff]  ;;  %v512_v45 = vld [vmem:[%s1111_s4 + $0x18] sm:$0xff] }
   0xf   : > { %s991_s20 = scalar_lea.vmem %s1107_s0, %s666_s10  ;;  %856 = vmatpush3.bf16.msra.mxu1 %v853_v17  ;;  %v881_v44 = vpack.c.bf16 %v510_v42, %v509_v41  ;;  %v885_v46 = vpack.c.bf16 %v512_v45, %v511_v43  ;;  %v513_v47 = vld [vmem:[%s1111_s4 + $0x20] sm:$0xff]  ;;  %v514_v48 = vld [vmem:[%s1111_s4 + $0x28] sm:$0xff]  ;;  %v333_v51 = vld [vmem:[%s1109_s2 + $0x10] sm:$0xff]  ;;  %s226_s16 = scalar_lea.vmem %s1112_s5, %s666_s10 }
  0x10   : > { %v1000_v16 = vld [vmem:[%s991_s20] sm:$0xff]  ;;  %858 = vmatprep.subr.bf16.mxu1 %v857_v23  ;;  %v1034_v34 = vld [vmem:[%s991_s20 + $0x8] sm:$0xff]  ;;  %v889_v49 = vpack.c.bf16 %v514_v48, %v513_v47  ;;  %v334_v52 = vld [vmem:[%s1109_s2 + $0x18] sm:$0xff] }
  0x11   : > { %757 = vmatprep.mubr.f32.mxu0 %v1000_v16  ;;  %828 = vmatpush3.bf16.msra.mxu0 %v825_v8  ;;  %v869_v57 = vpack.c.bf16 %v334_v52, %v333_v51  ;;  %v335_v59 = vld [vmem:[%s1109_s2 + $0x20] sm:$0xff]  ;;  %v336_v60 = vld [vmem:[%s1109_s2 + $0x28] sm:$0xff]  ;;  %v337_v0 = vld [vmem:[%s1109_s2 + $0x30] sm:$0xff] }
  0x12   : > { %830 = vmatprep.subr.bf16.mxu0 %v829_v20  ;;  %v873_v63 = vpack.c.bf16 %v336_v60, %v335_v59  ;;  %v338_v1 = vld [vmem:[%s1109_s2 + $0x38] sm:$0xff]  ;;  %v515_v3 = vld [vmem:[%s1111_s4 + $0x30] sm:$0xff] }
  0x13   : > { %860 = vmatpush3.bf16.msra.mxu1 %v857_v23  ;;  %v877_v2 = vpack.c.bf16 %v338_v1, %v337_v0  ;;  %v516_v4 = vld [vmem:[%s1111_s4 + $0x38] sm:$0xff] }
  0x14   : > { %862 = vmatprep.subr.bf16.mxu1 %v861_v37  ;;  %v893_v5 = vpack.c.bf16 %v516_v4, %v515_v3 }
  0x15   : > { %832 = vmatpush3.bf16.msra.mxu0 %v829_v20 }
  0x16   : > { %834 = vmatprep.subr.bf16.mxu0 %v833_v24 }
  0x17   : > { %864 = vmatpush3.bf16.msra.mxu1 %v861_v37 }
  0x18   : > { %866 = vmatprep.subr.bf16.mxu1 %v865_v40 }
  0x19   : > { %836 = vmatpush3.bf16.msra.mxu0 %v833_v24 }
  0x1a   : > { %838 = vmatprep.subr.bf16.mxu0 %v837_v27 }
  0x1d   : > { %840 = vmatpush3.bf16.msra.mxu0 %v837_v27 }
  0x1e   : > { %842 = vmatprep.subr.bf16.mxu0 %v841_v30 }
  0x21   : > { %844 = vmatpush3.bf16.msra.mxu0 %v841_v30 }
  0x22   : > { %846 = vmatprep.subr.bf16.mxu0 %v845_v33 }
  0x25   : > { %848 = vmatpush3.bf16.msra.mxu0 %v845_v33 }
  0x26   : > { %882 = vmatprep.subr.bf16.mxu0 %v881_v44 }
  0x28   : > { %758 = vmatmul.mubr.f32.vlgmr.msra.gmra.mrb[0].mxu0 %v1034_v34 }
  0x29   : > { %884 = vmatpush3.bf16.msra.mxu0 %v881_v44 }
  0x2a   : > { %886 = vmatprep.subr.bf16.mxu0 %v885_v46 }
  0x2d   : > { %888 = vmatpush3.bf16.msra.mxu0 %v885_v46 }
  0x2e   : > { %890 = vmatprep.subr.bf16.mxu0 %v889_v49 }
  0x31   : > { %892 = vmatpush3.bf16.msra.mxu0 %v889_v49 }
  0x32   : > { %894 = vmatprep.subr.bf16.mxu0 %v893_v5 }
  0x35   : > { %896 = vmatpush3.bf16.msra.mxu0 %v893_v5 }
  0xfb   : > { %v759_v50 = vpop.f32.mrb[0].mxu0 }
  0xfc   : > { %v322_v53 = vmax.f32 %v759_v50, 0.0  ;;  %v312_v54 = vpop.f32.mrb[1].mxu0 }
  0xfd   : > { %v321_v55 = vmax.f32 %v312_v54, 0.0 }
  0xfe   : > { %v327_v56 = vrot.slane %v322_v53, 7 }
  0xff   : > { %v326_v58 = vrot.slane %v321_v55, 7  ;;  %776 = vmatprep.mubr.msk.f32.mxu1 %vm347_vm0, %v321_v55 }
 0x100   : > { %777 = vmatmul.mubr.msk.f32.vlgmr.msra.gmra.mrb[0].mxu1 %vm347_vm0, %v322_v53 }
 0x101   : > { %868 = vmatpush3.bf16.msra.mxu1 %v865_v40  ;;  %v330_v61 = vsel %vm325_vm1, 0.0, %v326_v58  ;;  %v328_v62 = vsel %vm325_vm1, %v326_v58, %v327_v56 }
 0x102   : > { %795 = vmatprep.mubr.msk.f32.mxu1 %vm347_vm0, %v330_v61  ;;  %870 = vmatprep.subr.bf16.mxu1 %v869_v57 }
 0x105   : > { %872 = vmatpush3.bf16.msra.mxu1 %v869_v57 }
 0x106   : > { %874 = vmatprep.subr.bf16.mxu1 %v873_v63 }
 0x109   : > { %876 = vmatpush3.bf16.msra.mxu1 %v873_v63 }
 0x10a   : > { %878 = vmatprep.subr.bf16.mxu1 %v877_v2 }
 0x10d   : > { %880 = vmatpush3.bf16.msra.mxu1 %v877_v2 }
 0x110   : > { %796 = vmatmul.mubr.msk.f32.vlgmr.msra.gmra.mrb[0].mxu1 %vm347_vm0, %v328_v62 }
 0x1e3   : > { %v797_v6 = vpop.f32.mrb[0].mxu1 }
 0x1e4   : > { %v498_v7 = vpop.f32.mrb[1].mxu1  ;;  %v508_v9 = vmax.f32 %v797_v6, 0.0 }
 0x1e5   : > { %v507_v8 = vmax.f32 %v498_v7, 0.0 }
 0x1e7   : > { %814 = vmatprep.mubr.msk.f32.mxu0 %vm347_vm0, %v507_v8 }
 0x1e8   : > { %815 = vmatmul.mubr.msk.f32.vlgmr.msra.gmra.mrb[2].mxu0 %vm347_vm0, %v508_v9 }
 0x2bb   : > { %v816_v10 = vpop.f32.mrb[2].mxu0 }
 0x2bc   : > { %v599_v11 = vmax.f32 %v816_v10, 0.0  ;;  %v589_v12 = vpop.f32.mrb[3].mxu0 }
 0x2bd   : > { %v598_v13 = vmax.f32 %v589_v12, 0.0 }
 0x2be   : > { %v601_v15 = vadd.f32 %v599_v11, %v1034_v34 }
 0x2bf   : > { %v600_v14 = vadd.f32 %v598_v13, %v1000_v16 }
 0x2c0   : > { %603 = vst [vmem:[%s226_s16 + $0x8] sm:$0xff] %v601_v15 }
 0x2c1   : > { %602 = vst [vmem:[%s226_s16] sm:$0xff] %v600_v14 }
 0x2c2 PF: > { %s15_s18 = sadd.s32 1, %s913_s18  }
 0x2c3   : > { %p12_p4 = scmp.ge.s32.totalorder %s15_s18, 4  }
 0x2c5   :  { %14 = sbr.rel (!%p12_p4) target bundleno = 1 (0x1), region = 70 }

</bundles_post_ra>
